<compile_context>
chip_gen: v6e
topology: v6e:2x2x1
jax: 0.10.0
libtpu: 0.0.40
codegen_flags: <defaults>
</compile_context>

<pallas_src>
import functools

import jax
import jax.numpy as jnp
from jax.experimental import pallas as pl
from jax.experimental.pallas import tpu as pltpu

_EPS = 1e-12  # torch.nn.functional.normalize default eps


def _triplet_kernel(a_ref, p_ref, n_ref, out_ref, *, valid_rows, block_rows,
                    margin):
    i = pl.program_id(0)

    a = a_ref[...].astype(jnp.float32)
    p = p_ref[...].astype(jnp.float32)
    n = n_ref[...].astype(jnp.float32)

    # Five direct per-row reductions (no concat staging buffer).
    aa = jnp.sum(a * a, axis=-1, keepdims=True)          # (TB, 1)
    pp = jnp.sum(p * p, axis=-1, keepdims=True)
    nn = jnp.sum(n * n, axis=-1, keepdims=True)
    ap_dot = jnp.sum(a * p, axis=-1, keepdims=True)
    an_dot = jnp.sum(a * n, axis=-1, keepdims=True)

    # cos = dot / (max(||a||,eps) * max(||x||,eps));
    # rsqrt(max(s, eps^2)) == 1 / max(sqrt(s), eps)  (sqrt is monotone).
    inv_a = jax.lax.rsqrt(jnp.maximum(aa, _EPS * _EPS))
    inv_p = jax.lax.rsqrt(jnp.maximum(pp, _EPS * _EPS))
    inv_n = jax.lax.rsqrt(jnp.maximum(nn, _EPS * _EPS))

    ap = 1.0 - ap_dot * (inv_a * inv_p)                  # (TB, 1)
    an = 1.0 - an_dot * (inv_a * inv_n)
    diff = ap - an + margin

    # Mask (a) non-positive diffs and (b) rows past the true batch size
    # (the ragged last block reads unspecified data — possibly NaN/Inf —
    # which this mask excludes from both sum and count).
    row = jax.lax.broadcasted_iota(jnp.int32, diff.shape, 0) + i * block_rows
    mask = jnp.logical_and(diff > 0.0, row < valid_rows)

    pos_sum = jnp.sum(jnp.where(mask, diff, 0.0))
    pos_cnt = jnp.sum(mask.astype(jnp.float32))

    # Lane-dense per-block partial: sum at [0,0], count at [0,1], zeros else.
    sub = jax.lax.broadcasted_iota(jnp.int32, (8, 128), 0)
    lane = jax.lax.broadcasted_iota(jnp.int32, (8, 128), 1)
    out_ref[...] = jnp.where(
        jnp.logical_and(sub == 0, lane == 0), pos_sum,
        jnp.where(jnp.logical_and(sub == 0, lane == 1), pos_cnt, 0.0))


def pairwise_triplet_loss(user_emb, pos_emb, neg_emb, margin=0.1,
                          max_block_rows=None):
    """PairWise.forward (cosine triplet loss) on TPU via Pallas."""
    B, D = user_emb.shape
    itemsize = jnp.dtype(user_emb.dtype).itemsize
    rows_align = max(8, 32 // max(itemsize, 1))          # 8 f32, 16 bf16, 32 i8

    # Generation-aware VMEM budget: <=48 MiB resident, ~5/8 of physical
    # (v7x: 64 MiB phys -> ~40 MiB; v5e/v6e: 128 MiB phys -> 48 MiB cap).
    try:
        vmem_phys = int(pltpu.get_tpu_info().vmem_capacity_bytes)
    except Exception:  # pragma: no cover - conservative fallback
        vmem_phys = 64 * 1024 * 1024
    vmem_budget = min(48 * 1024 * 1024, vmem_phys * 5 // 8)

    # Resident bytes per row: 3 inputs x 2 pipeline buffers (native dtype)
    # + ~8 f32 row-wide intermediates (casts + products), conservative.
    row_bytes = D * (3 * 2 * itemsize + 8 * 4)
    tb_cap = max(rows_align, (vmem_budget // row_bytes) // rows_align * rows_align)
    tb_cap = min(tb_cap, 8192)
    if max_block_rows is not None:
        tb_cap = min(tb_cap,
                     max(rows_align, max_block_rows // rows_align * rows_align))

    if B <= tb_cap:
        tb, grid_n = B, 1                 # full-extent block: no alignment req.
    else:
        tb, grid_n = tb_cap, pl.cdiv(B, tb_cap)   # ragged last block is masked

    kernel = functools.partial(
        _triplet_kernel, valid_rows=B, block_rows=tb, margin=float(margin))

    in_spec = pl.BlockSpec((tb, D), lambda i: (i, 0))
    out_spec = pl.BlockSpec((8, 128), lambda i: (i, 0))

    cost = pl.CostEstimate(
        flops=int(10 * B * D),
        transcendentals=int(3 * B),
        bytes_accessed=int(3 * B * D * itemsize + grid_n * 8 * 128 * 4))

    parts = pl.pallas_call(
        kernel,
        out_shape=jax.ShapeDtypeStruct((grid_n * 8, 128), jnp.float32),
        grid=(grid_n,),
        in_specs=[in_spec, in_spec, in_spec],
        out_specs=out_spec,
        compiler_params=pltpu.CompilerParams(
            dimension_semantics=("parallel",),      # per-block partials, no carry
            vmem_limit_bytes=int(vmem_budget)),
        cost_estimate=cost,
    )(user_emb, pos_emb, neg_emb)

    # Finish the scalar mean in plain JAX.  Per-block counts are small exact
    # integers in f32; summing them as int32 keeps the count exact for any B.
    parts = parts.reshape(grid_n, 8, 128)
    total_sum = jnp.sum(parts[:, 0, 0])
    total_cnt = jnp.sum(parts[:, 0, 1].astype(jnp.int32)).astype(jnp.float32)
    return total_sum / total_cnt          # 0/0 -> NaN matches torch.mean(empty)


def _reference_loss(a, p, n, margin=0.1):
    """Pure-JAX reference mirroring the torch module (sanity check)."""
    def normalize(x):
        nrm = jnp.linalg.norm(x, axis=-1, keepdims=True)
        return x / jnp.maximum(nrm, _EPS)

    ap = 1.0 - jnp.sum(normalize(a) * normalize(p), axis=-1)
    an = 1.0 - jnp.sum(normalize(a) * normalize(n), axis=-1)
    diff = ap - an + margin
    mask = diff > 0.0
    return jnp.sum(jnp.where(mask, diff, 0.0)) / jnp.sum(mask.astype(jnp.float32))


if __name__ == "__main__":
    # No trainable parameters in PairWise (__init__ is a no-op).
    B, D = 8, 32
    key = jax.random.PRNGKey(0)
    k_u, k_p, k_n = jax.random.split(key, 3)
    user_embedding = jax.random.normal(k_u, (B, D), dtype=jnp.float32)
    positive_item_embedding = jax.random.normal(k_p, (B, D), dtype=jnp.float32)
    negative_item_embedding = jax.random.normal(k_n, (B, D), dtype=jnp.float32)

    loss = jax.block_until_ready(pairwise_triplet_loss(
        user_embedding, positive_item_embedding, negative_item_embedding))
    ref = _reference_loss(
        user_embedding, positive_item_embedding, negative_item_embedding)
    assert jnp.allclose(loss, ref, atol=1e-4, rtol=1e-4), (loss, ref)

    # Also exercise the multi-block path with a ragged last block.
    B2 = 20
    k2u, k2p, k2n = jax.random.split(jax.random.PRNGKey(1), 3)
    u2 = jax.random.normal(k2u, (B2, D), dtype=jnp.float32)
    p2 = jax.random.normal(k2p, (B2, D), dtype=jnp.float32)
    n2 = jax.random.normal(k2n, (B2, D), dtype=jnp.float32)
    loss2 = jax.block_until_ready(
        pairwise_triplet_loss(u2, p2, n2, max_block_rows=8))
    ref2 = _reference_loss(u2, p2, n2)
    assert jnp.allclose(loss2, ref2, atol=1e-4, rtol=1e-4), (loss2, ref2)

    print("KERNEL_OK")
</pallas_src>

<mosaic_0001>
module attributes {stable_mosaic.version = 11 : i64} {
  func.func @_triplet_kernel(%arg0: i32, %arg1: memref<8x32xf32, #tpu.memory_space<vmem>>, %arg2: memref<8x32xf32, #tpu.memory_space<vmem>>, %arg3: memref<8x32xf32, #tpu.memory_space<vmem>>, %arg4: memref<8x128xf32, #tpu.memory_space<vmem>>) attributes {dimension_semantics = [#tpu.dimension_semantics<parallel>], iteration_bounds = array<i64: 1>, scalar_prefetch = 0 : i64, scratch_operands = 0 : i64, tpu.core_type = #tpu.core_type<tc>, window_params = [{transform_indices = @transform_0, window_bounds = array<i64: 8, 32>}, {transform_indices = @transform_1, window_bounds = array<i64: 8, 32>}, {transform_indices = @transform_2, window_bounds = array<i64: 8, 32>}, {transform_indices = @transform_3, window_bounds = array<i64: 8, 128>}]} {
    %c0 = arith.constant 0 : index
    %c0_0 = arith.constant 0 : index
    %0 = vector.load %arg1[%c0, %c0_0] : memref<8x32xf32, #tpu.memory_space<vmem>>, vector<8x32xf32>
    %c0_1 = arith.constant 0 : index
    %c0_2 = arith.constant 0 : index
    %1 = vector.load %arg2[%c0_1, %c0_2] : memref<8x32xf32, #tpu.memory_space<vmem>>, vector<8x32xf32>
    %c0_3 = arith.constant 0 : index
    %c0_4 = arith.constant 0 : index
    %2 = vector.load %arg3[%c0_3, %c0_4] : memref<8x32xf32, #tpu.memory_space<vmem>>, vector<8x32xf32>
    %3 = arith.mulf %0, %0 : vector<8x32xf32>
    %cst = arith.constant dense<0.000000e+00> : vector<8xf32>
    %4 = vector.multi_reduction <add>, %3, %cst [1] : vector<8x32xf32> to vector<8xf32>
    %5 = vector.shape_cast %4 : vector<8xf32> to vector<8x1xf32>
    %6 = arith.mulf %1, %1 : vector<8x32xf32>
    %cst_5 = arith.constant dense<0.000000e+00> : vector<8xf32>
    %7 = vector.multi_reduction <add>, %6, %cst_5 [1] : vector<8x32xf32> to vector<8xf32>
    %8 = vector.shape_cast %7 : vector<8xf32> to vector<8x1xf32>
    %9 = arith.mulf %2, %2 : vector<8x32xf32>
    %cst_6 = arith.constant dense<0.000000e+00> : vector<8xf32>
    %10 = vector.multi_reduction <add>, %9, %cst_6 [1] : vector<8x32xf32> to vector<8xf32>
    %11 = vector.shape_cast %10 : vector<8xf32> to vector<8x1xf32>
    %12 = arith.mulf %0, %1 : vector<8x32xf32>
    %cst_7 = arith.constant dense<0.000000e+00> : vector<8xf32>
    %13 = vector.multi_reduction <add>, %12, %cst_7 [1] : vector<8x32xf32> to vector<8xf32>
    %14 = vector.shape_cast %13 : vector<8xf32> to vector<8x1xf32>
    %15 = arith.mulf %0, %2 : vector<8x32xf32>
    %cst_8 = arith.constant dense<0.000000e+00> : vector<8xf32>
    %16 = vector.multi_reduction <add>, %15, %cst_8 [1] : vector<8x32xf32> to vector<8xf32>
    %17 = vector.shape_cast %16 : vector<8xf32> to vector<8x1xf32>
    %cst_9 = arith.constant 1.000000e-24 : f32
    %18 = vector.broadcast %cst_9 : f32 to vector<8x1xf32>
    %19 = arith.maximumf %5, %18 : vector<8x1xf32>
    %20 = math.rsqrt %19 : vector<8x1xf32>
    %cst_10 = arith.constant 1.000000e-24 : f32
    %21 = vector.broadcast %cst_10 : f32 to vector<8x1xf32>
    %22 = arith.maximumf %8, %21 : vector<8x1xf32>
    %23 = math.rsqrt %22 : vector<8x1xf32>
    %cst_11 = arith.constant 1.000000e-24 : f32
    %24 = vector.broadcast %cst_11 : f32 to vector<8x1xf32>
    %25 = arith.maximumf %11, %24 : vector<8x1xf32>
    %26 = math.rsqrt %25 : vector<8x1xf32>
    %27 = arith.mulf %20, %23 : vector<8x1xf32>
    %28 = arith.mulf %14, %27 : vector<8x1xf32>
    %cst_12 = arith.constant 1.000000e+00 : f32
    %29 = vector.broadcast %cst_12 : f32 to vector<8x1xf32>
    %30 = arith.subf %29, %28 : vector<8x1xf32>
    %31 = arith.mulf %20, %26 : vector<8x1xf32>
    %32 = arith.mulf %17, %31 : vector<8x1xf32>
    %cst_13 = arith.constant 1.000000e+00 : f32
    %33 = vector.broadcast %cst_13 : f32 to vector<8x1xf32>
    %34 = arith.subf %33, %32 : vector<8x1xf32>
    %35 = arith.subf %30, %34 : vector<8x1xf32>
    %cst_14 = arith.constant 1.000000e-01 : f32
    %36 = vector.broadcast %cst_14 : f32 to vector<8x1xf32>
    %37 = arith.addf %35, %36 : vector<8x1xf32>
    %38 = tpu.iota {dimensions = array<i32: 0>} : vector<8x1xi32>
    %c8_i32 = arith.constant 8 : i32
    %39 = arith.muli %arg0, %c8_i32 : i32
    %40 = vector.broadcast %39 : i32 to vector<8x1xi32>
    %41 = arith.addi %38, %40 : vector<8x1xi32>
    %cst_15 = arith.constant 0.000000e+00 : f32
    %42 = vector.broadcast %cst_15 : f32 to vector<8x1xf32>
    %43 = arith.cmpf ogt, %37, %42 : vector<8x1xf32>
    %c8_i32_16 = arith.constant 8 : i32
    %44 = vector.broadcast %c8_i32_16 : i32 to vector<8x1xi32>
    %45 = arith.cmpi slt, %41, %44 : vector<8x1xi32>
    %46 = arith.andi %43, %45 : vector<8x1xi1>
    %cst_17 = arith.constant 0.000000e+00 : f32
    %47 = vector.broadcast %cst_17 : f32 to vector<8x1xf32>
    %48 = arith.select %46, %37, %47 : vector<8x1xi1>, vector<8x1xf32>
    %49 = vector.shape_cast %48 : vector<8x1xf32> to vector<1x8x1xf32>
    %cst_18 = arith.constant dense<0.000000e+00> : vector<1xf32>
    %50 = vector.multi_reduction <add>, %49, %cst_18 [1, 2] : vector<1x8x1xf32> to vector<1xf32>
    %51 = vector.shape_cast %50 : vector<1xf32> to vector<1x1x1xf32>
    %52 = vector.extract %51[0, 0, 0] : f32 from vector<1x1x1xf32>
    %53 = arith.extui %46 : vector<8x1xi1> to vector<8x1xi32>
    %54 = arith.sitofp %53 : vector<8x1xi32> to vector<8x1xf32>
    %55 = vector.shape_cast %54 : vector<8x1xf32> to vector<1x8x1xf32>
    %cst_19 = arith.constant dense<0.000000e+00> : vector<1xf32>
    %56 = vector.multi_reduction <add>, %55, %cst_19 [1, 2] : vector<1x8x1xf32> to vector<1xf32>
    %57 = vector.shape_cast %56 : vector<1xf32> to vector<1x1x1xf32>
    %58 = vector.extract %57[0, 0, 0] : f32 from vector<1x1x1xf32>
    %59 = tpu.iota {dimensions = array<i32: 0>} : vector<8x128xi32>
    %60 = tpu.iota {dimensions = array<i32: 1>} : vector<8x128xi32>
    %c0_i32 = arith.constant 0 : i32
    %61 = vector.broadcast %c0_i32 : i32 to vector<8x128xi32>
    %62 = arith.cmpi eq, %59, %61 : vector<8x128xi32>
    %c0_i32_20 = arith.constant 0 : i32
    %63 = vector.broadcast %c0_i32_20 : i32 to vector<8x128xi32>
    %64 = arith.cmpi eq, %60, %63 : vector<8x128xi32>
    %65 = arith.andi %62, %64 : vector<8x128xi1>
    %c0_i32_21 = arith.constant 0 : i32
    %66 = vector.broadcast %c0_i32_21 : i32 to vector<8x128xi32>
    %67 = arith.cmpi eq, %59, %66 : vector<8x128xi32>
    %c1_i32 = arith.constant 1 : i32
    %68 = vector.broadcast %c1_i32 : i32 to vector<8x128xi32>
    %69 = arith.cmpi eq, %60, %68 : vector<8x128xi32>
    %70 = arith.andi %67, %69 : vector<8x128xi1>
    %cst_22 = arith.constant 0.000000e+00 : f32
    %71 = vector.broadcast %58 : f32 to vector<8x128xf32>
    %72 = vector.broadcast %cst_22 : f32 to vector<8x128xf32>
    %73 = arith.select %70, %71, %72 : vector<8x128xi1>, vector<8x128xf32>
    %74 = vector.broadcast %52 : f32 to vector<8x128xf32>
    %75 = arith.select %65, %74, %73 : vector<8x128xi1>, vector<8x128xf32>
    %c0_23 = arith.constant 0 : index
    %c0_24 = arith.constant 0 : index
    %76 = vector.load %arg4[%c0_23, %c0_24] : memref<8x128xf32, #tpu.memory_space<vmem>>, vector<8x128xf32>
    tpu.vector_store %arg4[%c0_23, %c0_24], %75 {strides = array<i32>} : memref<8x128xf32, #tpu.memory_space<vmem>>, vector<8x128xf32>,
    return
  }
  func.func @transform_0(%arg0: i32) -> (i32, i32) {
    %c0_i32 = arith.constant 0 : i32
    %c0_i32_0 = arith.constant 0 : i32
    return %arg0, %c0_i32 : i32, i32
  }
  func.func @transform_1(%arg0: i32) -> (i32, i32) {
    %c0_i32 = arith.constant 0 : i32
    %c0_i32_0 = arith.constant 0 : i32
    return %arg0, %c0_i32 : i32, i32
  }
  func.func @transform_2(%arg0: i32) -> (i32, i32) {
    %c0_i32 = arith.constant 0 : i32
    %c0_i32_0 = arith.constant 0 : i32
    return %arg0, %c0_i32 : i32, i32
  }
  func.func @transform_3(%arg0: i32) -> (i32, i32) {
    %c0_i32 = arith.constant 0 : i32
    %c0_i32_0 = arith.constant 0 : i32
    return %arg0, %c0_i32 : i32, i32
  }
}

</mosaic_0001>

<bundles_post_ra>
// kernel: tpu_custom_call.1
= control target key start
LH: loop header
LB: loop body
LE: loop exit
PB: predicated region body
PF: predicated region fallthrough
CT: control target
= control target key end

     0   :  { %8 = vsyncpa [#allocation3], 0  ;;  %s292_s0 = inlined_call_operand.hbm [shape: f32[8,32], index: 0, kind: input, shape index: {}]   ;;  %s293_s1 = inlined_call_operand.hbm [shape: f32[8,32], index: 1, kind: input, shape index: {}]   ;;  %s294_s2 = inlined_call_operand.hbm [shape: f32[8,32], index: 2, kind: input, shape index: {}]   ;;  %s295_s3 = inlined_call_operand.hbm [shape: f32[8,128], index: 3, kind: output, shape index: {}]  }
   0x1   :  { %9 = vsyncpa [#allocation6], 0 }
   0x2   :  { %10 = vsyncpa [#allocation4], 0  ;;  %s250_s12 = smov [#allocation5]   ;;  %s251_s14 = smov [#allocation2]  }
   0x3   :  { %s27_s13 = sshll.u32 %s250_s12, 4  ;;  %s17_s15 = sshll.u32 %s251_s14, 4  ;;  %s28_s13 = int_to_ptr.vmem [resolvable:$true] %s27_s13  ;;  %s18_s15 = int_to_ptr.vmem [resolvable:$true] %s17_s15 }
   0x4   :  { %s172_s16 = scalar_lea.vmem %s28_s13, 128  ;;  %p177_p1 = scmp.lt.s32.totalorder %s28_s13, %s28_s13 }
   0x5   :  { %p173_p0 = scmp.ne.s32.totalorder %s28_s13, %s172_s16  ;;  %p178_p2 = scmp.lt.s32.totalorder %s172_s16, %s172_s16 }
   0x7   :  { %p179_p3 = por %p178_p2, %p177_p1 }
   0x9   :  { %p180_p4 = pnand %p179_p3, %p173_p0 }
   0xb   :  { %183 = shalt.err (!%p180_p4)
}
   0xc   :  { %30 = dma.hbm_to_vmem [thread:$0]  %s293_s1, 128, %s28_s13, [#allocation6]  }
   0xd   :  { %s192_s19 = scalar_lea.vmem %s18_s15, 128  ;;  %p197_p6 = scmp.lt.s32.totalorder %s18_s15, %s18_s15 }
   0xe   :  { %p193_p5 = scmp.ne.s32.totalorder %s18_s15, %s192_s19  ;;  %p198_p7 = scmp.lt.s32.totalorder %s192_s19, %s192_s19 }
  0x10   :  { %p199_p8 = por %p198_p7, %p197_p6 }
  0x12   :  { %p200_p9 = pnand %p199_p8, %p193_p5 }
  0x14   :  { %203 = shalt.err (!%p200_p9)
}
  0x15   :  { %20 = dma.hbm_to_vmem [thread:$0]  %s292_s0, 128, %s18_s15, [#allocation3]  }
  0x16   :  { %s252_s22 = smov [#allocation7]  }
  0x17   :  { %s37_s23 = sshll.u32 %s252_s22, 4  ;;  %s38_s23 = int_to_ptr.vmem [resolvable:$true] %s37_s23 }
  0x18   :  { %s212_s24 = scalar_lea.vmem %s38_s23, 128  ;;  %p217_p11 = scmp.lt.s32.totalorder %s38_s23, %s38_s23 }
  0x19   :  { %p213_p10 = scmp.ne.s32.totalorder %s38_s23, %s212_s24  ;;  %p218_p12 = scmp.lt.s32.totalorder %s212_s24, %s212_s24 }
  0x1b   :  { %p219_p13 = por %p218_p12, %p217_p11 }
  0x1d   :  { %p220_p0 = pnand %p219_p13, %p213_p10 }
  0x1f   :  { %223 = shalt.err (!%p220_p0)
}
  0x20   :  { %40 = dma.hbm_to_vmem [thread:$0]  %s294_s2, 128, %s38_s23, [#allocation6]  }
  0x21   :  { %244 = dma.done.wait [#allocation3], 128  }
  0x22   :  { %245 = vsyncadd [#allocation3], 4294967168 }
  0x23   :  { %246 = dma.done.wait [#allocation6], 256  }
  0x24   :  { %247 = vsyncadd [#allocation6], 4294967040  ;;  %v52_v0 = vld [vmem:[#allocation7] sm:$0xff]  ;;  %vm54_vm0 = vcmask 261120   ;;  %v50_v1 = vld [vmem:[#allocation2] sm:$0xff]  ;;  %vm97_vm1 = vcmask 7168   ;;  %v88_v51 = vlaneseq }
  0x25   :  { %v51_v2 = vld [vmem:[#allocation5] sm:$0xff]  ;;  %v62_v3 = vmul.f32 %v52_v0, %v52_v0  ;;  %v53_v4 = vmul.f32 %v50_v1, %v50_v1  ;;  %v70_v10 = vmul.f32 %v52_v0, %v50_v1  ;;  %v253_v32 = vmov 0.0   ;;  %s254_s2 = smov [#allocation8]  }
  0x26   :  { %v58_v5 = vmul.f32 %v51_v2, %v51_v2  ;;  %v66_v6 = vmul.f32 %v51_v2, %v50_v1  ;;  %v89_v52 = vshrl.u32 %v88_v51, 7  ;;  %v121_v53 = vand.u32 127, %v88_v51  ;;  %s138_s26 = sshll.u32 %s254_s2, 4  ;;  %s139_s26 = int_to_ptr.vmem [resolvable:$true] %s138_s26 }
  0x27   :  { %v63_v7 = vsel %vm54_vm0, %v62_v3, 0.0  ;;  %v55_v8 = vsel %vm54_vm0, %v53_v4, 0.0  ;;  %v71_v12 = vsel %vm54_vm0, %v70_v10, 0.0  ;;  %s224_s28 = scalar_lea.vmem %s139_s26, 128  ;;  %p229_p2 = scmp.lt.s32.totalorder %s139_s26, %s139_s26 }
  0x28   :  { %64 = vadd.xlane.f32.xlu1 %v63_v7  ;;  %56 = vadd.xlane.f32.xlu0 %v55_v8  ;;  %v59_v9 = vsel %vm54_vm0, %v58_v5, 0.0  ;;  %v67_v11 = vsel %vm54_vm0, %v66_v6, 0.0  ;;  %vm122_vm3 = vcmp.eq.s32.totalorder %v89_v52, 0  ;;  %vm125_vm4 = vcmp.eq.s32.totalorder %v121_v53, 1  ;;  %p225_p1 = scmp.ne.s32.totalorder %s139_s26, %s224_s28  ;;  %p230_p3 = scmp.lt.s32.totalorder %s224_s28, %s224_s28 }
  0x29   :  { %vm123_vm5 = vcmp.eq.s32.totalorder %v121_v53, 0  ;;  %vm126_vm6 = vmand %vm122_vm3, %vm125_vm4 }
  0x2a   :  { %vm124_vm7 = vmand %vm122_vm3, %vm123_vm5  ;;  %p231_p4 = por %p230_p3, %p229_p2 }
  0x2c   :  { %60 = vadd.xlane.f32.xlu0 %v59_v9  ;;  %68 = vadd.xlane.f32.xlu1 %v67_v11  ;;  %p232_p5 = pnand %p231_p4, %p225_p1 }
  0x30   :  { %72 = vadd.xlane.f32.xlu0 %v71_v12 }
  0xb1   :  { %v65_v13 = vpop.xlane.xlu1 %64  ;;  %v57_v14 = vpop.xlane.xlu0 %56 }
  0xb2   :  { %v78_v15 = vmax.f32 %v65_v13, 1e-24  ;;  %v74_v16 = vmax.f32 %v57_v14, 1e-24 }
  0xb4   :  { %158 = vrsqrt.f32 %v78_v15 }
  0xb5   :  { %160 = vrsqrt.f32 %v74_v16  ;;  %v61_v17 = vpop.xlane.xlu0 %60  ;;  %v69_v24 = vpop.xlane.xlu1 %68 }
  0xb6   :  { %v76_v18 = vmax.f32 %v61_v17, 1e-24 }
  0xb8   :  { %162 = vrsqrt.f32 %v76_v18 }
  0xb9   :  { %v73_v22 = vpop.xlane.xlu0 %72 }
  0xc1   :  { %v159_v19 = vpop.eup %158 }
  0xc2   :  { %v161_v20 = vpop.eup %160 }
  0xc3   :  { %v83_v21 = vmul.f32 %v161_v20, %v159_v19 }
  0xc5   :  { %v163_v23 = vpop.eup %162  ;;  %v84_v25 = vmul.f32 %v83_v21, %v73_v22 }
  0xc6   :  { %v80_v26 = vmul.f32 %v163_v23, %v161_v20 }
  0xc7   :  { %v85_v28 = vsub.f32 1.0, %v84_v25 }
  0xc8   :  { %v81_v27 = vmul.f32 %v80_v26, %v69_v24 }
  0xca   :  { %v82_v29 = vsub.f32 1.0, %v81_v27 }
  0xcc   :  { %v86_v30 = vsub.f32 %v82_v29, %v85_v28 }
  0xce   :  { %v87_v31 = vadd.f32 0.1, %v86_v30 }
  0xd0   :  { %vm93_vm2 = vcmp.gt.f32.partialorder %v87_v31, 0.0 }
  0xd1   :  { %v148_v33 = vsel %vm93_vm2, 1.0, %v253_v32  ;;  %v96_v34 = vsel %vm93_vm2, %v87_v31, 0.0 }
  0xd2   :  { %v110_v35 = vsel %vm97_vm1, %v148_v33, 0.0  ;;  %v98_v36 = vsel %vm97_vm1, %v96_v34, 0.0 }
  0xd3   :  { %111 = vadd.xlane.f32.xlu0 %v110_v35  ;;  %99 = vadd.xlane.f32.xlu1 %v98_v36 }
 0x15c   :  { %v112_v37 = vpop.xlane.xlu0 %111  ;;  %v100_v38 = vpop.xlane.xlu1 %99 }
 0x15d   :  { %v113_v39 = vrot.slane %v112_v37, 4  ;;  %v101_v40 = vrot.slane %v100_v38, 4 }
 0x15f   :  { %v114_v41 = vadd.f32 %v113_v39, %v112_v37  ;;  %v102_v42 = vadd.f32 %v101_v40, %v100_v38 }
 0x161   :  { %v115_v43 = vrot.slane %v114_v41, 2  ;;  %v103_v44 = vrot.slane %v102_v42, 2 }
 0x163   :  { %v116_v45 = vadd.f32 %v115_v43, %v114_v41  ;;  %v104_v46 = vadd.f32 %v103_v44, %v102_v42 }
 0x165   :  { %v105_v47 = vrot.slane %v104_v46, 1  ;;  %v117_v48 = vrot.slane %v116_v45, 1 }
 0x167   :  { %v106_v49 = vadd.f32 %v105_v47, %v104_v46  ;;  %v118_v50 = vadd.f32 %v117_v48, %v116_v45 }
 0x169   :  { %149 = vpush %v106_v49 }
 0x16a   :  { %151 = vpush %v118_v50 }
 0x19a   :  { %s150_s0 = spop %149 }
 0x19b   :  { %v129_v54 = vstv %s150_s0  ;;  %s152_s27 = spop %151 }
 0x19c   :  { %v127_v55 = vstv %s152_s27 }
 0x19d   :  { %v128_v56 = vsel %vm126_vm6, %v127_v55, 0.0 }
 0x19e   :  { %v130_v57 = vsel %vm124_vm7, %v129_v54, %v128_v56 }
 0x19f   :  { %131 = vst [vmem:[#allocation8] sm:$0xff] %v130_v57 }
 0x1a0   :  { %235 = shalt.err (!%p232_p5)
}
 0x1a1   :  { %141 = dma.vmem_to_hbm [thread:$0]  %s139_s26, 128, %s295_s3, [#allocation4]  }
 0x1a2   :  { %248 = dma.done.wait [#allocation4], 128  }
 0x1a3   :  { %249 = vsyncadd [#allocation4], 4294967168 }
 0x1a4   :  { %145 = vsyncpa [#allocation3], 1 }
 0x1a5   :  { %146 = vsyncpa [#allocation6], 1 }
 0x1a6   :  { %147 = vsyncpa [#allocation4], 1 }

</bundles_post_ra>
